<compile_context>
chip_gen: v7x
topology: tpu7x:2x2x1
jax: 0.10.0
libtpu: 0.0.40
codegen_flags: <defaults>
</compile_context>

<pallas_src>
import jax
import jax.numpy as jnp
from jax import lax
from jax.experimental import pallas as pl
from jax.experimental.pallas import tpu as pltpu


def basic_block_kernel(x_ref, s_up_ref, s_dn_ref,
                       w1_ref, b1_ref, w2_ref, b2_ref, out_ref):
    """One image per grid step.

    x_ref   : (H, W*C)      input slab (NHWC with W and C merged into lanes), f32
    s_up_ref: (H, H)        row-shift matrix (picks row h-1, zero at h=0), f32
    s_dn_ref: (H, H)        row-shift matrix (picks row h+1, zero at h=H-1), f32
    w1_ref  : (3*W*C, W*C)  conv1 3x3 as banded im2col weight, BN1 scale folded, bf16
    b1_ref  : (1, W*C)      folded BN1 bias (tiled across W), f32
    w2_ref  : (3*W*C, W*C)  conv2 3x3 likewise (BN2 scale folded), bf16
    b2_ref  : (1, W*C)      folded BN2 bias, f32
    out_ref : (H, W*C)
    """
    x = x_ref[...]                       # f32 identity (residual branch)
    s_up = s_up_ref[...]
    s_dn = s_dn_ref[...]

    def rows_im2col(a):
        # (H, W*C) -> (H, 3*W*C): [a[h-1], a[h], a[h+1]] with zero border rows.
        up = jnp.dot(s_up, a, preferred_element_type=jnp.float32)
        dn = jnp.dot(s_dn, a, preferred_element_type=jnp.float32)
        return jnp.concatenate([up, a, dn], axis=1).astype(jnp.bfloat16)

    # conv1 (3x3, pad=1) + bn1 + relu : one MXU matmul, K = 3*W*C
    h1 = jnp.dot(rows_im2col(x), w1_ref[...], preferred_element_type=jnp.float32)
    h1 = jnp.maximum(h1 + b1_ref[...], 0.0)

    # conv2 (3x3, pad=1) + bn2
    h2 = jnp.dot(rows_im2col(h1), w2_ref[...], preferred_element_type=jnp.float32)
    h2 = h2 + b2_ref[...]

    # residual identity add (downsample=None, stride=1) + final relu
    out_ref[...] = jnp.maximum(h2 + x, 0.0).astype(out_ref.dtype)


def _fold_bn(w_hwio, gamma, beta, mean, var, eps=1e-5):
    """Fold eval-mode BatchNorm into conv weight (scale) and a bias."""
    scale = gamma * lax.rsqrt(var + eps)          # (Cout,)
    bias = beta - mean * scale                    # (Cout,)
    return w_hwio * scale, bias                   # scale broadcasts on Cout axis


def _banded_im2col_weight(w_hwio, W):
    """(3, 3, Cin, Cout) -> (3*W*Cin, W*Cout) weight for the row-im2col matmul.

    For each vertical tap dy, builds a (W*Cin, W*Cout) block-banded matrix that
    applies the three horizontal taps (dx = -1, 0, +1) with zero padding at the
    left/right borders folded in.
    """
    _, _, Cin, Cout = w_hwio.shape
    blocks = []
    for dy in (-1, 0, 1):
        blk = jnp.zeros((W, Cin, W, Cout), w_hwio.dtype)
        for dx in (-1, 0, 1):
            # sel[w_in, w_out] = 1 iff w_in == w_out + dx (out-of-range dropped)
            sel = jnp.eye(W, k=-dx, dtype=w_hwio.dtype)
            blk = blk + jnp.einsum("uv,ic->uivc", sel, w_hwio[dy + 1, dx + 1])
        blocks.append(blk.reshape(W * Cin, W * Cout))
    return jnp.concatenate(blocks, axis=0)        # order matches [up, same, down]


def basic_block_forward(x_nchw, params):
    (w1, g1, be1, m1, v1, w2, g2, be2, m2, v2) = params
    N, Cin, H, W = x_nchw.shape
    planes = w1.shape[3]
    assert w1.shape == (3, 3, Cin, planes) and w2.shape == (3, 3, planes, planes)
    assert Cin == planes, "identity residual requires inplanes == planes"
    C = planes
    WC = W * C

    # Fold BN into conv weights / biases; build single-matmul conv weights.
    w1f, b1 = _fold_bn(w1, g1, be1, m1, v1)
    w2f, b2 = _fold_bn(w2, g2, be2, m2, v2)
    W1 = _banded_im2col_weight(w1f, W).astype(jnp.bfloat16)   # (3*WC, WC)
    W2 = _banded_im2col_weight(w2f, W).astype(jnp.bfloat16)   # (3*WC, WC)
    B1 = jnp.tile(b1, W).reshape(1, WC).astype(jnp.float32)
    B2 = jnp.tile(b2, W).reshape(1, WC).astype(jnp.float32)

    # Exact 0/1 row-shift matrices (built once in the wrapper).
    s_up = jnp.eye(H, k=-1, dtype=jnp.float32)    # (s_up @ a)[h] = a[h-1], 0 at h=0
    s_dn = jnp.eye(H, k=+1, dtype=jnp.float32)    # (s_dn @ a)[h] = a[h+1], 0 at h=H-1

    # NCHW -> NHWC, merge (W, C) into a 128-wide lane dim (layout plumbing in XLA).
    x = jnp.transpose(x_nchw, (0, 2, 3, 1)).reshape(N, H, WC).astype(jnp.float32)

    out = pl.pallas_call(
        basic_block_kernel,
        out_shape=jax.ShapeDtypeStruct((N, H, WC), jnp.float32),
        grid_spec=pltpu.PrefetchScalarGridSpec(
            num_scalar_prefetch=0,
            grid=(N,),
            in_specs=[
                pl.BlockSpec((pl.Squeezed(), H, WC), lambda n: (n, 0, 0)),
                pl.BlockSpec(s_up.shape, lambda n: (0, 0)),
                pl.BlockSpec(s_dn.shape, lambda n: (0, 0)),
                pl.BlockSpec(W1.shape, lambda n: (0, 0)),
                pl.BlockSpec(B1.shape, lambda n: (0, 0)),
                pl.BlockSpec(W2.shape, lambda n: (0, 0)),
                pl.BlockSpec(B2.shape, lambda n: (0, 0)),
            ],
            out_specs=pl.BlockSpec((pl.Squeezed(), H, WC), lambda n: (n, 0, 0)),
        ),
        compiler_params=pltpu.CompilerParams(
            dimension_semantics=("parallel",),
        ),
    )(x, s_up, s_dn, W1, B1, W2, B2)

    return jnp.transpose(out.reshape(N, H, W, C), (0, 3, 1, 2))  # -> NCHW


def basic_block_reference(x_nchw, params, match_bf16=True):
    """Pure-JAX reference (lax.conv) replicating the kernel's bf16 rounding points."""
    (w1, g1, be1, m1, v1, w2, g2, be2, m2, v2) = params
    x = jnp.transpose(x_nchw, (0, 2, 3, 1)).astype(jnp.float32)
    w1f, b1 = _fold_bn(w1, g1, be1, m1, v1)
    w2f, b2 = _fold_bn(w2, g2, be2, m2, v2)

    def q(a):
        return a.astype(jnp.bfloat16).astype(jnp.float32) if match_bf16 else a

    dn = ("NHWC", "HWIO", "NHWC")
    o = lax.conv_general_dilated(q(x), q(w1f), (1, 1), ((1, 1), (1, 1)),
                                 dimension_numbers=dn)
    o = jnp.maximum(o + b1, 0.0)
    o = lax.conv_general_dilated(q(o), q(w2f), (1, 1), ((1, 1), (1, 1)),
                                 dimension_numbers=dn)
    o = o + b2
    o = jnp.maximum(o + x, 0.0)
    return jnp.transpose(o, (0, 3, 1, 2))


def make_params(key, inplanes, planes):
    ks = jax.random.split(key, 4)

    def bn(k, c):
        kg, kb, km, kv = jax.random.split(k, 4)
        gamma = 1.0 + 0.1 * jax.random.normal(kg, (c,), jnp.float32)
        beta = 0.1 * jax.random.normal(kb, (c,), jnp.float32)
        mean = 0.1 * jax.random.normal(km, (c,), jnp.float32)
        var = jnp.abs(jax.random.normal(kv, (c,), jnp.float32)) + 0.5
        return gamma, beta, mean, var

    w1 = 0.1 * jax.random.normal(ks[0], (3, 3, inplanes, planes), jnp.float32)
    w2 = 0.1 * jax.random.normal(ks[1], (3, 3, planes, planes), jnp.float32)
    g1, be1, m1, v1 = bn(ks[2], planes)
    g2, be2, m2, v2 = bn(ks[3], planes)
    return (w1, g1, be1, m1, v1, w2, g2, be2, m2, v2)


if __name__ == "__main__":
    key = jax.random.PRNGKey(0)
    k_x, k_p = jax.random.split(key)

    # BasicBlock(inplanes=16, planes=16), batch=2, spatial 8x8  (W*C = 128 lanes).
    N, C, H, W = 2, 16, 8, 8
    x = jax.random.normal(k_x, (N, C, H, W), jnp.float32)
    params = make_params(k_p, C, C)

    out = jax.block_until_ready(basic_block_forward(x, params))
    ref = basic_block_reference(x, params)

    assert out.shape == (N, C, H, W)
    max_err = jnp.max(jnp.abs(out - ref))
    assert jnp.allclose(out, ref, rtol=1e-2, atol=1e-2), f"max abs err = {max_err}"
    print("KERNEL_OK")
</pallas_src>

<mosaic_0001>
module attributes {stable_mosaic.version = 11 : i64} {
  func.func @basic_block_kernel(%arg0: i32, %arg1: memref<1x8x128xf32, #tpu.memory_space<vmem>>, %arg2: memref<8x8xf32, #tpu.memory_space<vmem>>, %arg3: memref<8x8xf32, #tpu.memory_space<vmem>>, %arg4: memref<384x128xbf16, #tpu.memory_space<vmem>>, %arg5: memref<1x128xf32, #tpu.memory_space<vmem>>, %arg6: memref<384x128xbf16, #tpu.memory_space<vmem>>, %arg7: memref<1x128xf32, #tpu.memory_space<vmem>>, %arg8: memref<1x8x128xf32, #tpu.memory_space<vmem>>) attributes {dimension_semantics = [#tpu.dimension_semantics<parallel>], iteration_bounds = array<i64: 2>, scalar_prefetch = 0 : i64, scratch_operands = 0 : i64, tpu.core_type = #tpu.core_type<tc>, window_params = [{transform_indices = @transform_0, window_bounds = array<i64: 1, 8, 128>}, {pipeline_mode = #tpu.pipeline_mode<synchronous>, transform_indices = @transform_1, window_bounds = array<i64: 8, 8>}, {pipeline_mode = #tpu.pipeline_mode<synchronous>, transform_indices = @transform_2, window_bounds = array<i64: 8, 8>}, {pipeline_mode = #tpu.pipeline_mode<synchronous>, transform_indices = @transform_3, window_bounds = array<i64: 384, 128>}, {pipeline_mode = #tpu.pipeline_mode<synchronous>, transform_indices = @transform_4, window_bounds = array<i64: 1, 128>}, {pipeline_mode = #tpu.pipeline_mode<synchronous>, transform_indices = @transform_5, window_bounds = array<i64: 384, 128>}, {pipeline_mode = #tpu.pipeline_mode<synchronous>, transform_indices = @transform_6, window_bounds = array<i64: 1, 128>}, {transform_indices = @transform_7, window_bounds = array<i64: 1, 8, 128>}]} {
    %c0 = arith.constant 0 : index
    %c0_0 = arith.constant 0 : index
    %c0_1 = arith.constant 0 : index
    %0 = vector.load %arg1[%c0, %c0_0, %c0_1] : memref<1x8x128xf32, #tpu.memory_space<vmem>>, vector<1x8x128xf32>
    %1 = vector.shape_cast %0 : vector<1x8x128xf32> to vector<8x128xf32>
    %c0_2 = arith.constant 0 : index
    %c0_3 = arith.constant 0 : index
    %2 = vector.load %arg2[%c0_2, %c0_3] : memref<8x8xf32, #tpu.memory_space<vmem>>, vector<8x8xf32>
    %c0_4 = arith.constant 0 : index
    %c0_5 = arith.constant 0 : index
    %3 = vector.load %arg3[%c0_4, %c0_5] : memref<8x8xf32, #tpu.memory_space<vmem>>, vector<8x8xf32>
    %cst = arith.constant dense<0.000000e+00> : vector<8x128xf32>
    %4 = tpu.matmul %2, %1, %cst {dimension_numbers = #tpu.dot_dimension_numbers<[1], [0], [0], [1], [0, 0, 1, 1], [], []>} : vector<8x8xf32>, vector<8x128xf32>, vector<8x128xf32> -> vector<8x128xf32>
    %cst_6 = arith.constant dense<0.000000e+00> : vector<8x128xf32>
    %5 = tpu.matmul %3, %1, %cst_6 {dimension_numbers = #tpu.dot_dimension_numbers<[1], [0], [0], [1], [0, 0, 1, 1], [], []>} : vector<8x8xf32>, vector<8x128xf32>, vector<8x128xf32> -> vector<8x128xf32>
    %6 = tpu.concatenate %4, %1, %5 in 1 : vector<8x128xf32>, vector<8x128xf32>, vector<8x128xf32> -> vector<8x384xf32>
    %7 = arith.truncf %6 : vector<8x384xf32> to vector<8x384xbf16>
    %c0_7 = arith.constant 0 : index
    %c0_8 = arith.constant 0 : index
    %8 = vector.load %arg4[%c0_7, %c0_8] : memref<384x128xbf16, #tpu.memory_space<vmem>>, vector<384x128xbf16>
    %cst_9 = arith.constant dense<0.000000e+00> : vector<8x128xf32>
    %9 = tpu.matmul %7, %8, %cst_9 {dimension_numbers = #tpu.dot_dimension_numbers<[1], [0], [0], [1], [0, 0, 1, 1], [], []>} : vector<8x384xbf16>, vector<384x128xbf16>, vector<8x128xf32> -> vector<8x128xf32>
    %c0_10 = arith.constant 0 : index
    %c0_11 = arith.constant 0 : index
    %10 = vector.load %arg5[%c0_10, %c0_11] : memref<1x128xf32, #tpu.memory_space<vmem>>, vector<1x128xf32>
    %11 = vector.broadcast %10 : vector<1x128xf32> to vector<8x128xf32>
    %12 = arith.addf %9, %11 : vector<8x128xf32>
    %cst_12 = arith.constant 0.000000e+00 : f32
    %13 = vector.broadcast %cst_12 : f32 to vector<8x128xf32>
    %14 = arith.maximumf %12, %13 : vector<8x128xf32>
    %cst_13 = arith.constant dense<0.000000e+00> : vector<8x128xf32>
    %15 = tpu.matmul %2, %14, %cst_13 {dimension_numbers = #tpu.dot_dimension_numbers<[1], [0], [0], [1], [0, 0, 1, 1], [], []>} : vector<8x8xf32>, vector<8x128xf32>, vector<8x128xf32> -> vector<8x128xf32>
    %cst_14 = arith.constant dense<0.000000e+00> : vector<8x128xf32>
    %16 = tpu.matmul %3, %14, %cst_14 {dimension_numbers = #tpu.dot_dimension_numbers<[1], [0], [0], [1], [0, 0, 1, 1], [], []>} : vector<8x8xf32>, vector<8x128xf32>, vector<8x128xf32> -> vector<8x128xf32>
    %17 = tpu.concatenate %15, %14, %16 in 1 : vector<8x128xf32>, vector<8x128xf32>, vector<8x128xf32> -> vector<8x384xf32>
    %18 = arith.truncf %17 : vector<8x384xf32> to vector<8x384xbf16>
    %c0_15 = arith.constant 0 : index
    %c0_16 = arith.constant 0 : index
    %19 = vector.load %arg6[%c0_15, %c0_16] : memref<384x128xbf16, #tpu.memory_space<vmem>>, vector<384x128xbf16>
    %cst_17 = arith.constant dense<0.000000e+00> : vector<8x128xf32>
    %20 = tpu.matmul %18, %19, %cst_17 {dimension_numbers = #tpu.dot_dimension_numbers<[1], [0], [0], [1], [0, 0, 1, 1], [], []>} : vector<8x384xbf16>, vector<384x128xbf16>, vector<8x128xf32> -> vector<8x128xf32>
    %c0_18 = arith.constant 0 : index
    %c0_19 = arith.constant 0 : index
    %21 = vector.load %arg7[%c0_18, %c0_19] : memref<1x128xf32, #tpu.memory_space<vmem>>, vector<1x128xf32>
    %22 = vector.broadcast %21 : vector<1x128xf32> to vector<8x128xf32>
    %23 = arith.addf %20, %22 : vector<8x128xf32>
    %24 = arith.addf %23, %1 : vector<8x128xf32>
    %cst_20 = arith.constant 0.000000e+00 : f32
    %25 = vector.broadcast %cst_20 : f32 to vector<8x128xf32>
    %26 = arith.maximumf %24, %25 : vector<8x128xf32>
    %c0_21 = arith.constant 0 : index
    %c0_22 = arith.constant 0 : index
    %c0_23 = arith.constant 0 : index
    %27 = vector.load %arg8[%c0_21, %c0_22, %c0_23] : memref<1x8x128xf32, #tpu.memory_space<vmem>>, vector<1x8x128xf32>
    %28 = vector.shape_cast %27 : vector<1x8x128xf32> to vector<8x128xf32>
    %29 = vector.shape_cast %26 : vector<8x128xf32> to vector<1x8x128xf32>
    tpu.vector_store %arg8[%c0_21, %c0_22, %c0_23], %29 {strides = array<i32>} : memref<1x8x128xf32, #tpu.memory_space<vmem>>, vector<1x8x128xf32>,
    return
  }
  func.func @transform_0(%arg0: i32) -> (i32, i32, i32) {
    %c0_i32 = arith.constant 0 : i32
    %c0_i32_0 = arith.constant 0 : i32
    %c0_i32_1 = arith.constant 0 : i32
    return %arg0, %c0_i32, %c0_i32_0 : i32, i32, i32
  }
  func.func @transform_1(%arg0: i32) -> (i32, i32) {
    %c0_i32 = arith.constant 0 : i32
    %c0_i32_0 = arith.constant 0 : i32
    %c0_i32_1 = arith.constant 0 : i32
    return %c0_i32, %c0_i32_0 : i32, i32
  }
  func.func @transform_2(%arg0: i32) -> (i32, i32) {
    %c0_i32 = arith.constant 0 : i32
    %c0_i32_0 = arith.constant 0 : i32
    %c0_i32_1 = arith.constant 0 : i32
    return %c0_i32, %c0_i32_0 : i32, i32
  }
  func.func @transform_3(%arg0: i32) -> (i32, i32) {
    %c0_i32 = arith.constant 0 : i32
    %c0_i32_0 = arith.constant 0 : i32
    %c0_i32_1 = arith.constant 0 : i32
    return %c0_i32, %c0_i32_0 : i32, i32
  }
  func.func @transform_4(%arg0: i32) -> (i32, i32) {
    %c0_i32 = arith.constant 0 : i32
    %c0_i32_0 = arith.constant 0 : i32
    %c0_i32_1 = arith.constant 0 : i32
    return %c0_i32, %c0_i32_0 : i32, i32
  }
  func.func @transform_5(%arg0: i32) -> (i32, i32) {
    %c0_i32 = arith.constant 0 : i32
    %c0_i32_0 = arith.constant 0 : i32
    %c0_i32_1 = arith.constant 0 : i32
    return %c0_i32, %c0_i32_0 : i32, i32
  }
  func.func @transform_6(%arg0: i32) -> (i32, i32) {
    %c0_i32 = arith.constant 0 : i32
    %c0_i32_0 = arith.constant 0 : i32
    %c0_i32_1 = arith.constant 0 : i32
    return %c0_i32, %c0_i32_0 : i32, i32
  }
  func.func @transform_7(%arg0: i32) -> (i32, i32, i32) {
    %c0_i32 = arith.constant 0 : i32
    %c0_i32_0 = arith.constant 0 : i32
    %c0_i32_1 = arith.constant 0 : i32
    return %arg0, %c0_i32, %c0_i32_0 : i32, i32, i32
  }
}

</mosaic_0001>

<bundles_post_ra>
// kernel: tpu_custom_call.1
= control target key start
LH: loop header
LB: loop body
LE: loop exit
PB: predicated region body
PF: predicated region fallthrough
CT: control target
= control target key end

     0   :  { %12 = vsyncpa [#allocation3], 0  ;;  %s2280_s0 = inlined_call_operand.hbm [shape: f32[2,8,128], index: 0, kind: input, shape index: {}]   ;;  %s2281_s1 = inlined_call_operand.hbm [shape: f32[8,8], index: 1, kind: input, shape index: {}]   ;;  %s2282_s2 = inlined_call_operand.hbm [shape: f32[8,8], index: 2, kind: input, shape index: {}]   ;;  %s2283_s3 = inlined_call_operand.hbm [shape: bf16[384,128], index: 3, kind: input, shape index: {}]   ;;  %s2284_s4 = inlined_call_operand.vmem [shape: f32[1,128], index: 4, kind: input, shape index: {}]   ;;  %s2285_s5 = inlined_call_operand.hbm [shape: bf16[384,128], index: 5, kind: input, shape index: {}]   ;;  %s2286_s6 = inlined_call_operand.vmem [shape: f32[1,128], index: 6, kind: input, shape index: {}]   ;;  %s2287_s7 = inlined_call_operand.hbm [shape: f32[2,8,128], index: 7, kind: output, shape index: {}]  }
   0x1   :  { %14 = vsyncpa [#allocation3 + $0x1], 0 }
   0x2   :  { %15 = vsyncpa [#allocation6], 0 }
   0x3   :  { %16 = vsyncpa [#allocation9], 0 }
   0x4   :  { %17 = vsyncpa [#allocation4], 0 }
   0x5   :  { %19 = vsyncpa [#allocation4 + $0x1], 0  ;;  %s1940_s24 = smov 0   ;;  %s1942_s25 = smov 0  }
   0x6   :  { %s1944_s26 = smov 0   ;;  %s1946_s27 = smov 0  }
   0x7 LB: > { %s1890_s28 = smov [#allocation5]   ;;  %s1961_s30 = sadd.s32 4294967295, %s1888_s27   ;;  %s1888_s27 = sphi %s1946_s27, %s2311_s27   ;;  %s1884_s26 = sphi %s1944_s26, %s2310_s26   ;;  %s1880_s25 = sphi %s1942_s25, %s2309_s25   ;;  %s1876_s24 = sphi %s1940_s24, %s2308_s24  }
   0x8   : > { %s221_s29 = sshll.u32 %s1890_s28, 4  ;;  %p1330_p0 = scmp.ge.s32.totalorder %s1888_s27, 1  ;;  %s222_s29 = int_to_ptr.vmem [resolvable:$true] %s221_s29 }
   0x9   : > { %p2288_p1 = scmp.eq.s32.totalorder %s1961_s30, 0  ;;  %p208_p2 = scmp.lt.s32.totalorder %s1888_s27, 3 }
   0xa   : > { %s1891_s9 = smov [#allocation8]   ;;  %s1892_s12 = smov [#allocation7]  }
   0xb   : > { %p1966_p3 = pnand %p1330_p0, %p208_p2  ;;  %s242_s10 = sshll.u32 %s1891_s9, 4  ;;  %s1973_s10 = int_to_ptr.vmem [resolvable:$true] %s242_s10 }
   0xc   : > { %s232_s13 = sshll.u32 %s1892_s12, 4  ;;  %s1672_s16 = scalar_lea.hbm %s2281_s1, 128  ;;  %s1981_s13 = int_to_ptr.vmem [resolvable:$true] %s232_s13 }
   0xd   : > { %s2291_s8 = scalar_select %p1966_p3, 1, 0 }
   0xe   : > { %p1553_p5 = pneg %p1966_p3  ;;  %p1673_p7 = scmp.ne.s32.totalorder %s2281_s1, %s1672_s16 }
   0xf   : > { %p1679_p11 = scmp.lt.u32.totalorder %s1672_s16, %s2281_s1 }
  0x10   : > { %p1977_p6 = pnand %p1553_p5, %p2288_p1 }
  0x12   : > { %p1991_p8 = pneg %p1977_p6 }
  0x14   : > { %p1675_p9 = pnand %p1991_p8, %p1673_p7 }
  0x16   : > { %p1676_p10 = pneg %p1675_p9 }
  0x18   : > { %p1681_p12 = pnand %p1679_p11, %p1676_p10 }
  0x1a   : > { %1684 = shalt.err (!%p1681_p12)
}
  0x1b   : > { %s1685_s22 = scalar_lea.vmem %s222_s29, 128  ;;  %p1693_p5 = scmp.lt.s32.totalorder %s222_s29, %s222_s29 }
  0x1c   : > { %p1686_p13 = scmp.ne.s32.totalorder %s222_s29, %s1685_s22  ;;  %p1694_p4 = scmp.lt.s32.totalorder %s1685_s22, %s1685_s22 }
  0x1e   : > { %p1688_p0 = pnand %p1686_p13, %p1991_p8  ;;  %p1695_p1 = por %p1694_p4, %p1693_p5 }
  0x20   : > { %p1689_p2 = pneg %p1688_p0 }
  0x22   : > { %p1696_p3 = pnand %p1695_p1, %p1689_p2 }
  0x24   : > { %1699 = shalt.err (!%p1696_p3)
}
  0x25   : > { %1556 = dma.hbm_to_vmem [thread:$0]  (!%p1977_p6), %s2281_s1, 128, %s222_s29, [#allocation6]  }
  0x26   : > { %s1700_s14 = scalar_lea.hbm %s2283_s3, 3072 }
  0x27   : > { %p1701_p7 = scmp.ne.s32.totalorder %s2283_s3, %s1700_s14  ;;  %p1707_p1 = scmp.lt.u32.totalorder %s1700_s14, %s2283_s3 }
  0x29   : > { %p1703_p9 = pnand %p1701_p7, %p1991_p8 }
  0x2b   : > { %p1704_p4 = pneg %p1703_p9 }
  0x2d   : > { %p1709_p3 = pnand %p1707_p1, %p1704_p4 }
  0x2f   : > { %1712 = shalt.err (!%p1709_p3)
}
  0x30   : > { %s1713_s29 = scalar_lea.vmem %s1973_s10, 3072  ;;  %p1721_p13 = scmp.lt.s32.totalorder %s1973_s10, %s1973_s10 }
  0x31   : > { %p1714_p10 = scmp.ne.s32.totalorder %s1973_s10, %s1713_s29  ;;  %p1722_p0 = scmp.lt.s32.totalorder %s1713_s29, %s1713_s29 }
  0x33   : > { %p1716_p11 = pnand %p1714_p10, %p1991_p8  ;;  %p1723_p2 = por %p1722_p0, %p1721_p13 }
  0x35   : > { %p1717_p12 = pneg %p1716_p11 }
  0x37   : > { %p1724_p5 = pnand %p1723_p2, %p1717_p12 }
  0x39   : > { %1727 = shalt.err (!%p1724_p5)
}
  0x3a   : > { %s1893_s20 = smov 64   ;;  %s1894_s21 = smov 4  }
  0x3b   : > { %1562 = dma.hbm_to_vmem [thread:$0]  (!%p1977_p6), %s2283_s3, 3072, %s1973_s10, [#allocation9], %s1893_s20, %s1893_s20, %s1894_s21  }
  0x3c   : > { %s1728_s12 = scalar_lea.hbm %s2282_s2, 128 }
  0x3d   : > { %p1729_p7 = scmp.ne.s32.totalorder %s2282_s2, %s1728_s12  ;;  %p1735_p1 = scmp.lt.u32.totalorder %s1728_s12, %s2282_s2 }
  0x3f   : > { %p1731_p9 = pnand %p1729_p7, %p1991_p8 }
  0x41   : > { %p1732_p4 = pneg %p1731_p9 }
  0x43   : > { %p1737_p3 = pnand %p1735_p1, %p1732_p4 }
  0x45   : > { %1740 = shalt.err (!%p1737_p3)
}
  0x46   : > { %s1741_s10 = scalar_lea.vmem %s1981_s13, 128  ;;  %p1749_p13 = scmp.lt.s32.totalorder %s1981_s13, %s1981_s13 }
  0x47   : > { %p1742_p10 = scmp.ne.s32.totalorder %s1981_s13, %s1741_s10  ;;  %p1750_p0 = scmp.lt.s32.totalorder %s1741_s10, %s1741_s10 }
  0x49   : > { %p1744_p11 = pnand %p1742_p10, %p1991_p8  ;;  %p1751_p2 = por %p1750_p0, %p1749_p13 }
  0x4b   : > { %p1745_p12 = pneg %p1744_p11 }
  0x4d   : > { %p1752_p5 = pnand %p1751_p2, %p1745_p12 }
  0x4f   : > { %1755 = shalt.err (!%p1752_p5)
}
  0x50   : > { %1559 = dma.hbm_to_vmem [thread:$0]  (!%p1977_p6), %s2282_s2, 128, %s1981_s13, [#allocation6]  }
  0x51   : > { %s1895_s22 = smov [#allocation10]   ;;  %s1756_s12 = scalar_lea.hbm %s2285_s5, 3072 }
  0x52   : > { %s258_s23 = sshll.u32 %s1895_s22, 4  ;;  %p1757_p7 = scmp.ne.s32.totalorder %s2285_s5, %s1756_s12  ;;  %s259_s23 = int_to_ptr.vmem [resolvable:$true] %s258_s23 }
  0x53   : > { %p1763_p1 = scmp.lt.u32.totalorder %s1756_s12, %s2285_s5 }
  0x54   : > { %p1759_p9 = pnand %p1757_p7, %p1991_p8 }
  0x56   : > { %p1760_p4 = pneg %p1759_p9 }
  0x58   : > { %p1765_p3 = pnand %p1763_p1, %p1760_p4 }
  0x5a   : > { %1768 = shalt.err (!%p1765_p3)
}
  0x5b   : > { %s1769_s13 = scalar_lea.vmem %s259_s23, 3072  ;;  %p1777_p13 = scmp.lt.s32.totalorder %s259_s23, %s259_s23 }
  0x5c   : > { %p1770_p10 = scmp.ne.s32.totalorder %s259_s23, %s1769_s13  ;;  %p1778_p0 = scmp.lt.s32.totalorder %s1769_s13, %s1769_s13 }
  0x5e   : > { %p1772_p11 = pnand %p1770_p10, %p1991_p8  ;;  %p1779_p2 = por %p1778_p0, %p1777_p13 }
  0x60   : > { %p1773_p12 = pneg %p1772_p11 }
  0x62   : > { %p1780_p5 = pnand %p1779_p2, %p1773_p12 }
  0x64   : > { %1783 = shalt.err (!%p1780_p5)
}
  0x65   : > { %1565 = dma.hbm_to_vmem [thread:$0]  (!%p1977_p6), %s2285_s5, 3072, %s259_s23, [#allocation9], %s1893_s20, %s1893_s20, %s1894_s21  }
  0x66   : > { %s1329_s11 = sadd.s32 4294967294, %s1888_s27   ;;  %s2079_s19 = sadd.s32 1, %s1888_s27  }
  0x67   : > { %s29_s29 = ssub.s32 %s1888_s27, %s2079_s19  ;;  %s32_s22 = sadd.s32 1, %s1884_s26 }
  0x68   : > { %p30_p8 = scmp.eq.s32.totalorder %s29_s29, 0  ;;  %p39_p7 = scmp.ne.s32.totalorder %s1884_s26, %s1880_s25 }
  0x69   : > { %p40_p9 = scmp.eq.s32.totalorder %s1888_s27, 0  ;;  %p45_p4 = scmp.ne.s32.totalorder %s1880_s25, %s1876_s24 }
  0x6a   : > { %s2090_s28 = scalar_select %p30_p8, %s1884_s26, %s32_s22  }
  0x6b   : > { %p2092_p1 = por %p40_p9, %p39_p7  ;;  %p2295_p3 = scmp.eq.s32.totalorder %s1961_s30, 0 }
  0x6c   : > { %p195_p10 = scmp.eq.s32.totalorder %s1961_s30, 1  ;;  %p201_p11 = scmp.eq.s32.totalorder %s1329_s11, 1 }
  0x6d   : > { %p2098_p6 = por %p2295_p3, %p45_p4  ;;  %p1578_p12 = scmp.lt.s32.totalorder %s1888_s27, 2 }
  0x6e   : > { %s275_s21 = sand.u32 1, %s1884_s26   ;;  %p2105_p13 = por %p195_p10, %p39_p7 }
  0x6f   : > { %p2109_p0 = por %p201_p11, %p45_p4  ;;  %s1336_s14 = sshll.u32 %s275_s21, 3 }
  0x70   : > { %s2297_s23 = scalar_select %p2105_p13, 1, 0 }
  0x71   : > { %s2298_s12 = scalar_select %p2109_p0, 1, 0 }
  0x72   : > { %s1337_s15 = sshll.u32 %s1888_s27, 7  ;;  %s279_s10 = scalar_lea.vmem [#allocation2], %s1336_s14 }
  0x73   : > { %s2117_s13 = scalar_lea.hbm %s2280_s0, %s1337_s15  ;;  %s286_s18 = sshll.u32 %s279_s10, 4  ;;  %s2119_s18 = int_to_ptr.vmem [resolvable:$true] %s286_s18 }
  0x74   : > { %p2123_p2 = pnand %p1578_p12, %p2092_p1  ;;  %s276_s29 = scalar_lea.sflag [#allocation3], %s275_s21 }
  0x75   : > { %s1784_s22 = scalar_lea.hbm %s2117_s13, 128  ;;  %s1789_s16 = scalar_lea.hbm %s2280_s0, 256 }
  0x76   : > { %p1785_p5 = scmp.ne.s32.totalorder %s2117_s13, %s1784_s22  ;;  %p1786_p8 = pneg %p2123_p2 }
  0x77   : > { %p1790_p4 = scmp.lt.u32.totalorder %s2117_s13, %s2280_s0  ;;  %p1791_p1 = scmp.lt.u32.totalorder %s1789_s16, %s1784_s22 }
  0x78   : > { %p1787_p7 = pnand %p1786_p8, %p1785_p5  ;;  %p1793_p10 = scmp.lt.u32.totalorder %s1784_s22, %s2117_s13 }
  0x79   : > { %p1792_p3 = por %p1791_p1, %p1790_p4 }
  0x7a   : > { %p1788_p9 = pneg %p1787_p7 }
  0x7b   : > { %p1794_p11 = por %p1793_p10, %p1792_p3 }
  0x7d   : > { %p1795_p12 = pnand %p1794_p11, %p1788_p9 }
  0x7f   : > { %1798 = shalt.err (!%p1795_p12)
}
  0x80   : > { %s1799_s21 = scalar_lea.vmem %s2119_s18, 128  ;;  %s1896_s10 = smov [#allocation2]  }
  0x81   : > { %p1800_p5 = scmp.ne.s32.totalorder %s2119_s18, %s1799_s21  ;;  %s1804_s14 = sshll.u32 %s1896_s10, 4  ;;  %s1805_s14 = int_to_ptr.vmem [resolvable:$false] %s1804_s14 }
  0x82   : > { %s1806_s15 = scalar_lea.vmem %s1805_s14, 256  ;;  %p1807_p13 = scmp.lt.s32.totalorder %s2119_s18, %s1805_s14 }
  0x83   : > { %p1802_p7 = pnand %p1800_p5, %p1786_p8  ;;  %p1808_p4 = scmp.lt.s32.totalorder %s1806_s15, %s1799_s21 }
  0x85   : > { %p1803_p0 = pneg %p1802_p7  ;;  %p1809_p1 = por %p1808_p4, %p1807_p13 }
  0x87   : > { %p1810_p3 = pnand %p1809_p1, %p1803_p0 }
  0x89   : > { %1813 = shalt.err (!%p1810_p3)
}
  0x8a   : > { %1569 = dma.hbm_to_vmem [thread:$0]  (!%p2123_p2), %s2117_s13, 128, %s2119_s18, %s276_s29  }
  0x8b   : > { %p2300_p9 = scmp.ne.s32.totalorder %s2291_s8, 0 }
  0x8c   : > { %s2155_s22 = sand.u32 (!%p2300_p9), 1, %s1880_s25  }
  0x8d   : > { %295 = sbr.rel (%p2300_p9) target bundleno = 1047 (0x417), region = 48  ;;  %s1339_s16 = sshll.u32 (!%p2300_p9), %s2155_s22, 3 }
  0x8e   : > { %s298_s9 = scalar_lea.sflag (!%p2300_p9), [#allocation3], %s2155_s22  ;;  %s301_s17 = scalar_lea.vmem (!%p2300_p9), [#allocation2], %s1339_s16 }
  0x94   : > { %1859 = dma.done.wait (%p2098_p6), %s298_s9, 128  }
  0x95   : > { %1861 = vsyncadd (%p2098_p6), %s298_s9, 4294967168  ;;  %p2301_p13 = scmp.eq.s32.totalorder %s1961_s30, 0 }
  0x97   : > { %1863 = dma.done.wait (%p2301_p13), [#allocation6], 256   ;;  %p2302_p0 = pmov %p2301_p13 }
  0x99   : > { %1865 = vsyncadd (%p2302_p0), [#allocation6], 4294967040  ;;  %p2303_p2 = pmov %p2302_p0 }
  0x9a   : > { %p2304_p8 = pmov %p2302_p0 }
  0x9b   : > { %1867 = dma.done.wait (%p2303_p2), [#allocation9], 6144  }
  0x9c   : > { %1869 = vsyncadd (%p2304_p8), [#allocation9], 4294961152  ;;  %v1897_v0 = vmov 0.0   ;;  %vm1898_vm0 = vmmov 0   ;;  %vm352_vm1 = vcmask 64512   ;;  %v2179_v1 = vld [vmem:[%s301_s17] sm:$0xff] }
  0x9d   : > { %1473 = vmatprep.subr.mxu0 %v1897_v0  ;;  %1475 = vmatprep.mubr.msk.f32.mxu0 %vm1898_vm0, %v1897_v0  ;;  %v2181_v2 = vld [vmem:[#allocation5] sm:$0xff]  ;;  %v2183_v3 = vld [vmem:[#allocation7] sm:$0xff]  ;;  %v1624_v4 = vld [vmem:[#allocation8 + $0x40] sm:$0xff]   ;;  %v500_v27 = vpack.c.bf16 %v2179_v1, %v2179_v1  ;;  %s1400_s11 = sshll.u32 %s1961_s30, 7  ;;  %s347_s29 = scalar_lea.vmem [#allocation11], %s1339_s16 }
  0x9e   : > { %1478 = vmatprep.subr.mxu1 %v1897_v0  ;;  %1480 = vmatprep.mubr.msk.f32.mxu1 %vm1898_vm0, %v1897_v0  ;;  %v1625_v5 = vld [vmem:[#allocation8] sm:$0xff]   ;;  %v1627_v7 = vld [vmem:[#allocation8 + $0x48] sm:$0xff]   ;;  %v1630_v10 = vld [vmem:[#allocation8 + $0x50] sm:$0xff]   ;;  %s1221_s21 = sshll.u32 %s347_s29, 4  ;;  %s2236_s15 = scalar_lea.hbm %s2287_s7, %s1400_s11  ;;  %s2238_s21 = int_to_ptr.vmem [resolvable:$true] %s1221_s21 }
  0x9f   : > { %1474 = vmatpush3.msra.mxu0 %v2179_v1  ;;  %1479 = vmatpush3.msra.mxu1 %v2179_v1  ;;  %v1626_v6 = vld [vmem:[#allocation8 + $0x80] sm:$0xff]   ;;  %v1628_v8 = vld [vmem:[#allocation8 + $0x8] sm:$0xff]   ;;  %v1631_v11 = vld [vmem:[#allocation8 + $0x10] sm:$0xff]   ;;  %s1208_s9 = scalar_lea.sflag [#allocation4], %s2155_s22  ;;  %s1814_s17 = scalar_lea.vmem %s2238_s21, 128 }
  0xa0   : > { %1476 = vmatmul.mubr.msk.f32.vlgmr.msra.gmra.mrb[0].mxu0 %vm352_vm1, %v2181_v2  ;;  %1481 = vmatmul.mubr.msk.f32.vlgmr.msra.gmra.mrb[0].mxu1 %vm352_vm1, %v2183_v3  ;;  %v1629_v9 = vld [vmem:[#allocation8 + $0x88] sm:$0xff]   ;;  %v1632_v12 = vld [vmem:[#allocation8 + $0x90] sm:$0xff]   ;;  %v1633_v13 = vld [vmem:[#allocation8 + $0x58] sm:$0xff]   ;;  %p1815_p6 = scmp.ne.s32.totalorder %s2238_s21, %s1814_s17  ;;  %p2305_p10 = scmp.ne.s32.totalorder %s2297_s23, 0 }
  0xa1   : > { %1407 = vmatprep.subr.bf16.mxu0 %v1624_v4  ;;  %1483 = vmatprep.subr.bf16.mxu1 %v1897_v0  ;;  %v1634_v14 = vld [vmem:[#allocation8 + $0x18] sm:$0xff]   ;;  %v1636_v16 = vld [vmem:[#allocation8 + $0x60] sm:$0xff]   ;;  %v1639_v19 = vld [vmem:[#allocation8 + $0x68] sm:$0xff]   ;;  %s1899_s30 = smov [#allocation11]  }
  0xa2   : > { %1408 = vmatpush3.bf16.msra.mxu0 %v1625_v5  ;;  %1499 = vmatprep.mubr.msk.bf16.mxu1 %vm1898_vm0, %v1897_v0  ;;  %v1635_v15 = vld [vmem:[#allocation8 + $0x98] sm:$0xff]   ;;  %v1637_v17 = vld [vmem:[#allocation8 + $0x20] sm:$0xff]   ;;  %v1640_v20 = vld [vmem:[#allocation8 + $0x28] sm:$0xff]   ;;  %p1816_p11 = pnand %p1815_p6, %p2305_p10  ;;  %s1818_s16 = sshll.u32 %s1899_s30, 4  ;;  %s1819_s16 = int_to_ptr.vmem [resolvable:$false] %s1818_s16 }
  0xa3   : > { %1484 = vmatpush3.bf16.msra.mxu1 %v1626_v6  ;;  %1409 = vmatprep.subr.bf16.mxu0 %v1627_v7  ;;  %v1638_v18 = vld [vmem:[#allocation8 + $0xa0] sm:$0xff]   ;;  %v1641_v21 = vld [vmem:[#allocation8 + $0xa8] sm:$0xff]   ;;  %v1642_v22 = vld [vmem:[#allocation8 + $0x70] sm:$0xff]   ;;  %s1820_s8 = scalar_lea.vmem %s1819_s16, 256  ;;  %p1821_p5 = scmp.lt.s32.totalorder %s2238_s21, %s1819_s16 }
  0xa4   : > { %1485 = vmatprep.subr.bf16.mxu1 %v1897_v0  ;;  %v1643_v23 = vld [vmem:[#allocation8 + $0x30] sm:$0xff]   ;;  %v1645_v25 = vld [vmem:[#allocation8 + $0x78] sm:$0xff]   ;;  %733 = vmatprep.mubr.bf16.mxu0 %v500_v27  ;;  %v1347_v38 = vld [vmem:[%s2284_s4] ss:$0 sm:$0xff]  ;;  %p1817_p12 = pneg %p1816_p11  ;;  %p1822_p7 = scmp.lt.s32.totalorder %s1820_s8, %s1814_s17 }
  0xa5   : > { %v1644_v24 = vld [vmem:[#allocation8 + $0xb0] sm:$0xff]   ;;  %v1646_v26 = vld [vmem:[#allocation8 + $0x38] sm:$0xff]   ;;  %v1648_v48 = vld [vmem:[#allocation10 + $0x40] sm:$0xff]  }
  0xa6   : > { %1410 = vmatpush3.bf16.msra.mxu0 %v1628_v8  ;;  %v1647_v28 = vld [vmem:[#allocation8 + $0xb8] sm:$0xff]   ;;  %v1649_v49 = vld [vmem:[#allocation10] sm:$0xff]   ;;  %v1650_v51 = vld [vmem:[#allocation10 + $0x48] sm:$0xff]   ;;  %p1823_p4 = por %p1822_p7, %p1821_p5 }
  0xa7   : > { %1486 = vmatpush3.bf16.msra.mxu1 %v1629_v9  ;;  %1411 = vmatprep.subr.bf16.mxu0 %v1630_v10  ;;  %v1652_v52 = vld [vmem:[#allocation10 + $0x80] sm:$0xff]   ;;  %v1651_v53 = vld [vmem:[#allocation10 + $0x8] sm:$0xff]   ;;  %v1653_v54 = vld [vmem:[#allocation10 + $0x50] sm:$0xff]  }
  0xa8   : > { %1487 = vmatprep.subr.bf16.mxu1 %v1897_v0  ;;  %v1655_v55 = vld [vmem:[#allocation10 + $0x88] sm:$0xff]   ;;  %v1654_v56 = vld [vmem:[#allocation10 + $0x10] sm:$0xff]   ;;  %v1656_v57 = vld [vmem:[#allocation10 + $0x58] sm:$0xff]   ;;  %p1824_p1 = pnand %p1823_p4, %p1817_p12 }
  0xa9   : > { %v1658_v58 = vld [vmem:[#allocation10 + $0x90] sm:$0xff]   ;;  %v1657_v59 = vld [vmem:[#allocation10 + $0x18] sm:$0xff]   ;;  %v1659_v60 = vld [vmem:[#allocation10 + $0x60] sm:$0xff]  }
  0xaa   : > { %1412 = vmatpush3.bf16.msra.mxu0 %v1631_v11  ;;  %v1661_v61 = vld [vmem:[#allocation10 + $0x98] sm:$0xff]   ;;  %v1660_v62 = vld [vmem:[#allocation10 + $0x20] sm:$0xff]   ;;  %v1662_v63 = vld [vmem:[#allocation10 + $0x68] sm:$0xff]  }
  0xab   : > { %1488 = vmatpush3.bf16.msra.mxu1 %v1632_v12  ;;  %1413 = vmatprep.subr.bf16.mxu0 %v1633_v13  ;;  %v1665_v4 = vld [vmem:[#allocation10 + $0x70] sm:$0xff]   ;;  %v1667_v5 = vld [vmem:[#allocation10 + $0xa8] sm:$0xff]   ;;  %v1668_v7 = vld [vmem:[#allocation10 + $0x78] sm:$0xff]  }
  0xac   : > { %1489 = vmatprep.subr.bf16.mxu1 %v1897_v0  ;;  %v1666_v6 = vld [vmem:[#allocation10 + $0x30] sm:$0xff]   ;;  %v1669_v9 = vld [vmem:[#allocation10 + $0x38] sm:$0xff]  }
  0xad   : > { %v1670_v8 = vld [vmem:[#allocation10 + $0xb0] sm:$0xff]   ;;  %v1671_v10 = vld [vmem:[#allocation10 + $0xb8] sm:$0xff]  }
  0xae   : > { %1414 = vmatpush3.bf16.msra.mxu0 %v1634_v14 }
  0xaf   : > { %1490 = vmatpush3.bf16.msra.mxu1 %v1635_v15  ;;  %1415 = vmatprep.subr.bf16.mxu0 %v1636_v16 }
  0xb0   : > { %1491 = vmatprep.subr.bf16.mxu1 %v1897_v0 }
  0xb2   : > { %1416 = vmatpush3.bf16.msra.mxu0 %v1637_v17 }
  0xb3   : > { %1492 = vmatpush3.bf16.msra.mxu1 %v1638_v18  ;;  %1417 = vmatprep.subr.bf16.mxu0 %v1639_v19 }
  0xb4   : > { %1493 = vmatprep.subr.bf16.mxu1 %v1897_v0 }
  0xb6   : > { %1418 = vmatpush3.bf16.msra.mxu0 %v1640_v20 }
  0xb7   : > { %1494 = vmatpush3.bf16.msra.mxu1 %v1641_v21  ;;  %1419 = vmatprep.subr.bf16.mxu0 %v1642_v22 }
  0xb8   : > { %1495 = vmatprep.subr.bf16.mxu1 %v1897_v0 }
  0xba   : > { %1420 = vmatpush3.bf16.msra.mxu0 %v1643_v23 }
  0xbb   : > { %1496 = vmatpush3.bf16.msra.mxu1 %v1644_v24  ;;  %1421 = vmatprep.subr.bf16.mxu0 %v1645_v25 }
  0xbc   : > { %1497 = vmatprep.subr.bf16.mxu1 %v1897_v0 }
  0xbe   : > { %1422 = vmatpush3.bf16.msra.mxu0 %v1646_v26 }
  0xbf   : > { %1503 = vmatprep.subr.mxu0 %v1897_v0  ;;  %1498 = vmatpush3.bf16.msra.mxu1 %v1647_v28 }
  0xc0   : > { %1508 = vmatprep.subr.mxu1 %v1897_v0 }
 0x173   : > { %v422_v29 = vpop.f32.mrb[0].mxu0  ;;  %v495_v30 = vpop.f32.mrb[0].mxu1 }
 0x174   : > { %v499_v31 = vpack.c.bf16 %v422_v29, %v422_v29  ;;  %v1477_v32 = vpop.f32.mrb[1].mxu0  ;;  %v501_v33 = vpack.c.bf16 %v495_v30, %v495_v30  ;;  %v1482_v34 = vpop.f32.mrb[1].mxu1 }
 0x176   : > { %734 = vmatmul.mubr.bf16.vlgmr.msra.gmra.mrb[4].mxu0 %v499_v31  ;;  %1500 = vmatmul.mubr.bf16.vlgmr.msra.gmra.mrb[4].mxu1 %v501_v33 }
 0x177   : > { %1505 = vmatprep.mubr.msk.f32.mxu0 %vm1898_vm0, %v1897_v0  ;;  %1510 = vmatprep.mubr.msk.f32.mxu1 %vm1898_vm0, %v1897_v0 }
 0x249   : > { %v1423_v35 = vpop.f32.mrb[4].mxu0  ;;  %v775_v36 = vpop.f32.mrb[4].mxu1 }
 0x24a   : > { %v1424_v37 = vpop.f32.mrb[5].mxu0  ;;  %v1501_v39 = vpop.f32.mrb[5].mxu1 }
 0x24b   : > { %v1425_v40 = vadd.f32 %v1424_v37, %v1423_v35  ;;  %v1426_v41 = vpop.f32.mrb[6].mxu0  ;;  %v778_v42 = vpop.f32.mrb[6].mxu1 }
 0x24c   : > { %v1427_v43 = vpop.f32.mrb[7].mxu0  ;;  %v1502_v44 = vpop.f32.mrb[7].mxu1 }
 0x24d   : > { %v736_v45 = vadd.f32 %v1425_v40, %v1347_v38 }
 0x24f   : > { %v776_v46 = vadd.f32 %v775_v36, %v736_v45 }
 0x251   : > { %v781_v47 = vmax.f32 %v776_v46, 0.0 }
 0x253   : > { %1504 = vmatpush3.msra.mxu0 %v781_v47  ;;  %1509 = vmatpush3.msra.mxu1 %v781_v47  ;;  %v923_v50 = vpack.c.bf16 %v781_v47, %v781_v47 }
 0x254   : > { %1506 = vmatmul.mubr.msk.f32.vlgmr.msra.gmra.mrb[2].mxu0 %vm352_vm1, %v2181_v2  ;;  %1511 = vmatmul.mubr.msk.f32.vlgmr.msra.gmra.mrb[2].mxu1 %vm352_vm1, %v2183_v3  ;;  %v1664_v2 = vld [vmem:[#allocation10 + $0xa0] sm:$0xff]   ;;  %v1663_v3 = vld [vmem:[#allocation10 + $0x28] sm:$0xff]  }
 0x255   : > { %1156 = vmatprep.mubr.bf16.mxu0 %v923_v50  ;;  %1442 = vmatprep.subr.bf16.mxu0 %v1648_v48 }
 0x256   : > { %1443 = vmatpush3.bf16.msra.mxu0 %v1649_v49  ;;  %1513 = vmatprep.subr.bf16.mxu1 %v1897_v0 }
 0x257   : > { %1444 = vmatprep.subr.bf16.mxu0 %v1650_v51  ;;  %1514 = vmatpush3.bf16.msra.mxu1 %v1652_v52 }
 0x258   : > { %1515 = vmatprep.subr.bf16.mxu1 %v1897_v0  ;;  %1529 = vmatprep.mubr.msk.bf16.mxu1 %vm1898_vm0, %v1897_v0 }
 0x25a   : > { %1445 = vmatpush3.bf16.msra.mxu0 %v1651_v53 }
 0x25b   : > { %1446 = vmatprep.subr.bf16.mxu0 %v1653_v54  ;;  %1516 = vmatpush3.bf16.msra.mxu1 %v1655_v55 }
 0x25c   : > { %1517 = vmatprep.subr.bf16.mxu1 %v1897_v0 }
 0x25e   : > { %1447 = vmatpush3.bf16.msra.mxu0 %v1654_v56 }
 0x25f   : > { %1448 = vmatprep.subr.bf16.mxu0 %v1656_v57  ;;  %1518 = vmatpush3.bf16.msra.mxu1 %v1658_v58 }
 0x260   : > { %1519 = vmatprep.subr.bf16.mxu1 %v1897_v0 }
 0x262   : > { %1449 = vmatpush3.bf16.msra.mxu0 %v1657_v59 }
 0x263   : > { %1450 = vmatprep.subr.bf16.mxu0 %v1659_v60  ;;  %1520 = vmatpush3.bf16.msra.mxu1 %v1661_v61 }
 0x264   : > { %1521 = vmatprep.subr.bf16.mxu1 %v1897_v0 }
 0x266   : > { %1451 = vmatpush3.bf16.msra.mxu0 %v1660_v62 }
 0x267   : > { %1452 = vmatprep.subr.bf16.mxu0 %v1662_v63  ;;  %1522 = vmatpush3.bf16.msra.mxu1 %v1664_v2 }
 0x268   : > { %1523 = vmatprep.subr.bf16.mxu1 %v1897_v0 }
 0x26a   : > { %1453 = vmatpush3.bf16.msra.mxu0 %v1663_v3 }
 0x26b   : > { %1454 = vmatprep.subr.bf16.mxu0 %v1665_v4  ;;  %1524 = vmatpush3.bf16.msra.mxu1 %v1667_v5 }
 0x26c   : > { %1525 = vmatprep.subr.bf16.mxu1 %v1897_v0 }
 0x26e   : > { %1455 = vmatpush3.bf16.msra.mxu0 %v1666_v6 }
 0x26f   : > { %1456 = vmatprep.subr.bf16.mxu0 %v1668_v7  ;;  %1526 = vmatpush3.bf16.msra.mxu1 %v1670_v8 }
 0x270   : > { %1527 = vmatprep.subr.bf16.mxu1 %v1897_v0  ;;  %v1374_v0 = vld [vmem:[%s2286_s6] ss:$0 sm:$0xff] }
 0x272   : > { %1457 = vmatpush3.bf16.msra.mxu0 %v1669_v9 }
 0x273   : > { %1528 = vmatpush3.bf16.msra.mxu1 %v1671_v10 }
 0x327   : > { %v848_v11 = vpop.f32.mrb[2].mxu0  ;;  %v918_v12 = vpop.f32.mrb[2].mxu1 }
 0x328   : > { %v922_v13 = vpack.c.bf16 %v848_v11, %v848_v11  ;;  %v1507_v14 = vpop.f32.mrb[3].mxu0  ;;  %v924_v15 = vpack.c.bf16 %v918_v12, %v918_v12  ;;  %v1512_v16 = vpop.f32.mrb[3].mxu1 }
 0x32a   : > { %1157 = vmatmul.mubr.bf16.vlgmr.msra.gmra.mrb[8].mxu0 %v922_v13  ;;  %1530 = vmatmul.mubr.bf16.vlgmr.msra.gmra.mrb[8].mxu1 %v924_v15 }
 0x3fd   : > { %v1458_v17 = vpop.f32.mrb[8].mxu0  ;;  %v1198_v18 = vpop.f32.mrb[8].mxu1 }
 0x3fe   : > { %v1459_v19 = vpop.f32.mrb[9].mxu0  ;;  %v1531_v20 = vpop.f32.mrb[9].mxu1 }
 0x3ff   : > { %v1460_v21 = vadd.f32 %v1459_v19, %v1458_v17  ;;  %v1461_v22 = vpop.f32.mrb[10].mxu0  ;;  %v1201_v23 = vpop.f32.mrb[10].mxu1 }
 0x400   : > { %v1462_v24 = vpop.f32.mrb[11].mxu0  ;;  %v1532_v25 = vpop.f32.mrb[11].mxu1 }
 0x401   : > { %v1159_v26 = vadd.f32 %v1460_v21, %v1374_v0 }
 0x403   : > { %v1199_v27 = vadd.f32 %v1198_v18, %v1159_v26 }
 0x405   : > { %v1204_v28 = vadd.f32 %v1199_v27, %v2179_v1 }
 0x407   : > { %v1205_v29 = vmax.f32 %v1204_v28, 0.0 }
 0x409   : > { %1206 = vst [vmem:[%s347_s29] sm:$0xff] %v1205_v29 }
 0x40a   : > { %1827 = shalt.err (!%p1824_p1)
}
 0x40b   : > { %s1828_s22 = scalar_lea.hbm %s2236_s15, 128  ;;  %s1832_s18 = scalar_lea.hbm %s2287_s7, 256 }
 0x40c   : > { %p1829_p3 = scmp.ne.s32.totalorder %s2236_s15, %s1828_s22  ;;  %p1833_p0 = scmp.lt.u32.totalorder %s2236_s15, %s2287_s7 }
 0x40d   : > { %p1834_p2 = scmp.lt.u32.totalorder %s1832_s18, %s1828_s22  ;;  %p1836_p6 = scmp.lt.u32.totalorder %s1828_s22, %s2236_s15 }
 0x40e   : > { %p1830_p9 = pnand %p1829_p3, %p2305_p10 }
 0x40f   : > { %p1835_p8 = por %p1834_p2, %p1833_p0 }
 0x410   : > { %p1831_p13 = pneg %p1830_p9 }
 0x411   : > { %p1837_p11 = por %p1836_p6, %p1835_p8 }
 0x413   : > { %p1838_p12 = pnand %p1837_p11, %p1831_p13 }
 0x415   : > { %1841 = shalt.err (!%p1838_p12)
}
 0x416   : > { %1551 = dma.vmem_to_hbm [thread:$0]  (%p2305_p10), %s2238_s21, 128, %s2236_s15, %s1208_s9  }
 0x417 PF: > { %s1233_s10 = sand.u32 1, %s1876_s24   ;;  %p2306_p5 = scmp.ne.s32.totalorder %s2298_s12, 0 }
 0x418   : > { %p2307_p7 = scmp.ge.s32.totalorder %s1888_s27, 2  ;;  %s1234_s14 = scalar_lea.sflag [#allocation4], %s1233_s10 }
 0x41a   : > { %p1571_p4 = pnand %p2307_p7, %p2306_p5 }
 0x41c   : > { %1871 = dma.done.wait (!%p1571_p4), %s1234_s14, 128  }
 0x41d   : > { %1873 = vsyncadd (!%p1571_p4), %s1234_s14, 4294967168  ;;  %p22_p1 = scmp.ge.s32.totalorder %s2079_s19, 4   ;;  %s2308_s24 = smov %s1880_s25 }
 0x41e   : > { %s2309_s25 = smov %s1884_s26  ;;  %s2310_s26 = smov %s2090_s28 }
 0x41f   : > { %s2311_s27 = smov %s2079_s19  ;;  %24 = sbr.rel (!%p22_p1) target bundleno = 7 (0x7), region = 109 }
 0x426   :  { %1239 = vsyncpa [#allocation3], 1 }
 0x427   :  { %1241 = vsyncpa [#allocation3 + $0x1], 1 }
 0x428   :  { %1242 = vsyncpa [#allocation6], 1 }
 0x429   :  { %1243 = vsyncpa [#allocation9], 1 }
 0x42a   :  { %1244 = vsyncpa [#allocation4], 1 }
 0x42b   :  { %1246 = vsyncpa [#allocation4 + $0x1], 1 }

</bundles_post_ra>
